<compile_context>
chip_gen: v7x
topology: tpu7x:2x2x1
jax: 0.10.0
libtpu: 0.0.40
codegen_flags: <defaults>
</compile_context>

<pallas_src>
import functools

import jax
import jax.numpy as jnp
from jax.experimental import pallas as pl
from jax.experimental.pallas import tpu as pltpu


# Lane widths tried (largest first) so the flattened size divides exactly and
# no padding copy is needed.  All are multiples of 128 -> unmasked, lane-dense
# vector stores.
_LANE_CANDIDATES = (2048, 1024, 512, 256, 128)

# Target elements per block (~1 MiB in f32 per pipeline buffer).
_TARGET_BLOCK_ELEMS = 128 * 2048


def _focal_terms(x, t, alpha: float, gamma: float):
    """Elementwise focal loss in f32.

    Shares a single exp(-|x|) between the BCE-with-logits term and the
    sigmoid, and special-cases small integer gamma (the common 2.0) to plain
    VPU multiplies instead of jnp.power's exp/log path.
    """
    e = jnp.exp(-jnp.abs(x))                              # EUP: exp (shared)
    # stable BCE-with-logits: max(x,0) - x*t + log1p(exp(-|x|))
    ce = jnp.maximum(x, 0.0) - x * t + jnp.log1p(e)       # EUP: log1p
    # sigmoid(x) from e:  x>=0 -> 1/(1+e),  x<0 -> e/(1+e)
    inv = 1.0 / (1.0 + e)
    p = jnp.where(x >= 0.0, inv, e * inv)
    p_t = p * t + (1.0 - p) * (1.0 - t)
    m = 1.0 - p_t

    g = float(gamma)
    if g == int(g) and 0 <= int(g) <= 8:
        gi = int(g)
        mod = jnp.ones_like(m) if gi == 0 else m
        for _ in range(gi - 1):
            mod = mod * m
    else:
        mod = jnp.power(m, jnp.float32(g))

    loss = ce * mod
    if alpha >= 0:
        loss = (alpha * t + (1.0 - alpha) * (1.0 - t)) * loss
    return loss


def _focal_elemwise_kernel(x_ref, t_ref, o_ref, *, alpha, gamma):
    x = x_ref[...].astype(jnp.float32)
    t = t_ref[...].astype(jnp.float32)
    # single write of the whole block, in the caller's dtype
    o_ref[...] = _focal_terms(x, t, alpha, gamma).astype(o_ref.dtype)


def _focal_reduce_kernel(x_ref, t_ref, acc_ref, *, alpha, gamma,
                         n_valid, block_rows, lane):
    """Accumulates masked per-block partial sums into a VMEM-resident block."""
    i = pl.program_id(0)

    @pl.when(i == 0)
    def _():
        acc_ref[...] = jnp.zeros_like(acc_ref)

    x = x_ref[...].astype(jnp.float32)
    t = t_ref[...].astype(jnp.float32)

    # Global flat index of each element in this block; masks both the padded
    # tail and any ragged (out-of-bounds) rows of the last block.
    # NOTE: int32 index math assumes < 2**31 total elements.
    rows = jax.lax.broadcasted_iota(jnp.int32, x.shape, 0)
    cols = jax.lax.broadcasted_iota(jnp.int32, x.shape, 1)
    flat = (i * block_rows + rows) * lane + cols
    valid = flat < n_valid

    # Zero the inputs in invalid positions so no garbage reaches the math.
    x = jnp.where(valid, x, 0.0)
    t = jnp.where(valid, t, 0.0)
    loss = _focal_terms(x, t, alpha, gamma)
    acc_ref[...] += jnp.where(valid, loss, 0.0)


def _pick_layout(n: int):
    """Choose (lane, rows, padded) for a lane-dense 2D view of n elements."""
    for lane in _LANE_CANDIDATES:
        if n % lane == 0:
            return lane, n // lane, 0
    # Rare fallback: flattened size is not a multiple of 128; pad once
    # (at most 127 elements; costs one extra input copy).
    lane = 128
    pad = (-n) % lane
    return lane, (n + pad) // lane, pad


def focal_loss_torchvision_pallas(inputs, targets, alpha: float = 0.25,
                                  gamma: float = 2.0, reduction: str = "none"):
    """Equivalent of FocalLossTorchvision.forward for (B, C, ...) inputs."""
    B, C = inputs.shape[:2]
    out_dtype = inputs.dtype
    x1 = inputs.reshape(-1)
    t1 = targets.reshape(-1)
    n = x1.shape[0]

    lane, rows, pad = _pick_layout(n)
    if pad:
        x1 = jnp.pad(x1, (0, pad))
        t1 = jnp.pad(t1, (0, pad))
    x2 = x1.reshape(rows, lane)
    t2 = t1.reshape(rows, lane)

    # Rows per block: multiple of 8 (full-sublane vregs), ~1 MiB f32 per buffer,
    # or the full row count for small inputs.
    br = max(8, (_TARGET_BLOCK_ELEMS // lane) // 8 * 8)
    block_rows = rows if rows <= br else br
    grid = (pl.cdiv(rows, block_rows),)

    in_specs = [
        pl.BlockSpec((block_rows, lane), lambda i: (i, 0)),
        pl.BlockSpec((block_rows, lane), lambda i: (i, 0)),
    ]

    if reduction == "none":
        out2 = pl.pallas_call(
            functools.partial(_focal_elemwise_kernel, alpha=alpha, gamma=gamma),
            out_shape=jax.ShapeDtypeStruct((rows, lane), out_dtype),
            grid=grid,
            in_specs=in_specs,
            out_specs=pl.BlockSpec((block_rows, lane), lambda i: (i, 0)),
            compiler_params=pltpu.CompilerParams(
                dimension_semantics=("parallel",)),
        )(x2, t2)
        out = out2.reshape(-1)
        if out.shape[0] != n:
            out = out[:n]
        return out.reshape(B, C, -1)

    # Fused 'sum' / 'mean': never write the elementwise loss to HBM.
    kernel = functools.partial(_focal_reduce_kernel, alpha=alpha, gamma=gamma,
                               n_valid=n, block_rows=block_rows, lane=lane)
    partial_sums = pl.pallas_call(
        kernel,
        out_shape=jax.ShapeDtypeStruct((block_rows, lane), jnp.float32),
        grid=grid,
        in_specs=in_specs,
        # constant block index -> output stays resident in VMEM as accumulator
        out_specs=pl.BlockSpec((block_rows, lane), lambda i: (0, 0)),
        compiler_params=pltpu.CompilerParams(
            dimension_semantics=("arbitrary",)),
    )(x2, t2)
    total = jnp.sum(partial_sums)
    if reduction == "mean":
        total = total / jnp.float32(n)
    return total.astype(out_dtype)


def _focal_loss_ref(inputs, targets, alpha=0.25, gamma=2.0, reduction="none"):
    B, C = inputs.shape[:2]
    x = inputs.reshape(B, C, -1).astype(jnp.float32)
    t = targets.reshape(B, C, -1).astype(jnp.float32)
    p = jax.nn.sigmoid(x)
    ce = jnp.maximum(x, 0.0) - x * t + jnp.log1p(jnp.exp(-jnp.abs(x)))
    p_t = p * t + (1 - p) * (1 - t)
    loss = ce * (1 - p_t) ** gamma
    if alpha >= 0:
        loss = (alpha * t + (1 - alpha) * (1 - t)) * loss
    if reduction == "mean":
        loss = jnp.mean(loss)
    elif reduction == "sum":
        loss = jnp.sum(loss)
    return loss


if __name__ == "__main__":
    key = jax.random.PRNGKey(0)
    k1, k2 = jax.random.split(key)

    B, C, H, W = 2, 4, 16, 16
    logits = jax.random.normal(k1, (B, C, H, W), dtype=jnp.float32) * 2.0
    targets = (jax.random.uniform(k2, (B, C, H, W)) > 0.5).astype(jnp.float32)

    # default reduction='none' path
    out = focal_loss_torchvision_pallas(logits, targets,
                                        alpha=0.25, gamma=2.0, reduction="none")
    out = jax.block_until_ready(out)
    ref = _focal_loss_ref(logits, targets, 0.25, 2.0, "none")
    assert out.shape == (B, C, H * W), out.shape
    assert jnp.allclose(out, ref, atol=1e-5, rtol=1e-5), \
        float(jnp.max(jnp.abs(out - ref)))

    # fused-reduction paths
    for red in ("sum", "mean"):
        got = jax.block_until_ready(
            focal_loss_torchvision_pallas(logits, targets, 0.25, 2.0, red))
        want = _focal_loss_ref(logits, targets, 0.25, 2.0, red)
        assert jnp.allclose(got, want, atol=1e-4, rtol=1e-4), \
            (red, float(got), float(want))

    print("KERNEL_OK")
</pallas_src>

<mosaic_0001>
module attributes {stable_mosaic.version = 11 : i64} {
  func.func @_focal_elemwise_kernel(%arg0: i32, %arg1: memref<1x2048xf32, #tpu.memory_space<vmem>>, %arg2: memref<1x2048xf32, #tpu.memory_space<vmem>>, %arg3: memref<1x2048xf32, #tpu.memory_space<vmem>>) attributes {dimension_semantics = [#tpu.dimension_semantics<parallel>], iteration_bounds = array<i64: 1>, scalar_prefetch = 0 : i64, scratch_operands = 0 : i64, tpu.core_type = #tpu.core_type<tc>, window_params = [{transform_indices = @transform_0, window_bounds = array<i64: 1, 2048>}, {transform_indices = @transform_1, window_bounds = array<i64: 1, 2048>}, {transform_indices = @transform_2, window_bounds = array<i64: 1, 2048>}]} {
    %c0 = arith.constant 0 : index
    %c0_0 = arith.constant 0 : index
    %0 = vector.load %arg1[%c0, %c0_0] : memref<1x2048xf32, #tpu.memory_space<vmem>>, vector<1x2048xf32>
    %c0_1 = arith.constant 0 : index
    %c0_2 = arith.constant 0 : index
    %1 = vector.load %arg2[%c0_1, %c0_2] : memref<1x2048xf32, #tpu.memory_space<vmem>>, vector<1x2048xf32>
    %2 = math.absf %0 : vector<1x2048xf32>
    %cst = arith.constant 0.000000e+00 : f32
    %3 = vector.broadcast %cst : f32 to vector<1x2048xf32>
    %4 = arith.subf %3, %2 : vector<1x2048xf32>
    %5 = math.exp %4 : vector<1x2048xf32>
    %cst_3 = arith.constant 0.000000e+00 : f32
    %6 = vector.broadcast %cst_3 : f32 to vector<1x2048xf32>
    %7 = arith.maximumf %0, %6 : vector<1x2048xf32>
    %8 = arith.mulf %0, %1 : vector<1x2048xf32>
    %9 = arith.subf %7, %8 : vector<1x2048xf32>
    %10 = math.log1p %5 : vector<1x2048xf32>
    %11 = arith.addf %9, %10 : vector<1x2048xf32>
    %cst_4 = arith.constant 1.000000e+00 : f32
    %12 = vector.broadcast %cst_4 : f32 to vector<1x2048xf32>
    %13 = arith.addf %12, %5 : vector<1x2048xf32>
    %cst_5 = arith.constant 1.000000e+00 : f32
    %14 = vector.broadcast %cst_5 : f32 to vector<1x2048xf32>
    %15 = arith.divf %14, %13 : vector<1x2048xf32>
    %cst_6 = arith.constant 0.000000e+00 : f32
    %16 = vector.broadcast %cst_6 : f32 to vector<1x2048xf32>
    %17 = arith.cmpf oge, %0, %16 : vector<1x2048xf32>
    %18 = arith.mulf %5, %15 : vector<1x2048xf32>
    %19 = arith.select %17, %15, %18 : vector<1x2048xi1>, vector<1x2048xf32>
    %20 = arith.mulf %19, %1 : vector<1x2048xf32>
    %cst_7 = arith.constant 1.000000e+00 : f32
    %21 = vector.broadcast %cst_7 : f32 to vector<1x2048xf32>
    %22 = arith.subf %21, %19 : vector<1x2048xf32>
    %cst_8 = arith.constant 1.000000e+00 : f32
    %23 = vector.broadcast %cst_8 : f32 to vector<1x2048xf32>
    %24 = arith.subf %23, %1 : vector<1x2048xf32>
    %25 = arith.mulf %22, %24 : vector<1x2048xf32>
    %26 = arith.addf %20, %25 : vector<1x2048xf32>
    %cst_9 = arith.constant 1.000000e+00 : f32
    %27 = vector.broadcast %cst_9 : f32 to vector<1x2048xf32>
    %28 = arith.subf %27, %26 : vector<1x2048xf32>
    %29 = arith.mulf %28, %28 : vector<1x2048xf32>
    %30 = arith.mulf %11, %29 : vector<1x2048xf32>
    %cst_10 = arith.constant 2.500000e-01 : f32
    %31 = vector.broadcast %cst_10 : f32 to vector<1x2048xf32>
    %32 = arith.mulf %31, %1 : vector<1x2048xf32>
    %cst_11 = arith.constant 1.000000e+00 : f32
    %33 = vector.broadcast %cst_11 : f32 to vector<1x2048xf32>
    %34 = arith.subf %33, %1 : vector<1x2048xf32>
    %cst_12 = arith.constant 7.500000e-01 : f32
    %35 = vector.broadcast %cst_12 : f32 to vector<1x2048xf32>
    %36 = arith.mulf %35, %34 : vector<1x2048xf32>
    %37 = arith.addf %32, %36 : vector<1x2048xf32>
    %38 = arith.mulf %37, %30 : vector<1x2048xf32>
    %c0_13 = arith.constant 0 : index
    %c0_14 = arith.constant 0 : index
    %39 = vector.load %arg3[%c0_13, %c0_14] : memref<1x2048xf32, #tpu.memory_space<vmem>>, vector<1x2048xf32>
    tpu.vector_store %arg3[%c0_13, %c0_14], %38 {strides = array<i32>} : memref<1x2048xf32, #tpu.memory_space<vmem>>, vector<1x2048xf32>,
    return
  }
  func.func @transform_0(%arg0: i32) -> (i32, i32) {
    %c0_i32 = arith.constant 0 : i32
    %c0_i32_0 = arith.constant 0 : i32
    return %arg0, %c0_i32 : i32, i32
  }
  func.func @transform_1(%arg0: i32) -> (i32, i32) {
    %c0_i32 = arith.constant 0 : i32
    %c0_i32_0 = arith.constant 0 : i32
    return %arg0, %c0_i32 : i32, i32
  }
  func.func @transform_2(%arg0: i32) -> (i32, i32) {
    %c0_i32 = arith.constant 0 : i32
    %c0_i32_0 = arith.constant 0 : i32
    return %arg0, %c0_i32 : i32, i32
  }
}

</mosaic_0001>

<bundles_post_ra>
// kernel: tpu_custom_call.1
= control target key start
LH: loop header
LB: loop body
LE: loop exit
PB: predicated region body
PF: predicated region fallthrough
CT: control target
= control target key end

     0   :  { %7 = vsyncpa [#allocation3], 0  ;;  %s281_s0 = inlined_call_operand.hbm [shape: f32[1,2048], index: 0, kind: input, shape index: {}]   ;;  %s282_s1 = inlined_call_operand.hbm [shape: f32[1,2048], index: 1, kind: input, shape index: {}]   ;;  %s283_s2 = inlined_call_operand.hbm [shape: f32[1,2048], index: 2, kind: output, shape index: {}]  }
   0x1   :  { %8 = vsyncpa [#allocation6], 0 }
   0x2   :  { %9 = vsyncpa [#allocation4], 0  ;;  %s215_s9 = smov [#allocation2]   ;;  %s216_s11 = smov [#allocation5]  }
   0x3   :  { %s16_s10 = sshll.u32 %s215_s9, 4  ;;  %s26_s12 = sshll.u32 %s216_s11, 4  ;;  %s17_s10 = int_to_ptr.vmem [resolvable:$true] %s16_s10  ;;  %s27_s12 = int_to_ptr.vmem [resolvable:$true] %s26_s12 }
   0x4   :  { %s143_s15 = scalar_lea.hbm %s281_s0, 256 }
   0x5   :  { %p144_p0 = scmp.ne.s32.totalorder %s281_s0, %s143_s15  ;;  %p147_p1 = scmp.lt.u32.totalorder %s143_s15, %s281_s0 }
   0x7   :  { %p149_p2 = pnand %p147_p1, %p144_p0 }
   0x9   :  { %152 = shalt.err (!%p149_p2)
}
   0xa   :  { %s153_s20 = scalar_lea.vmem %s17_s10, 256  ;;  %p158_p4 = scmp.lt.s32.totalorder %s17_s10, %s17_s10 }
   0xb   :  { %p154_p3 = scmp.ne.s32.totalorder %s17_s10, %s153_s20  ;;  %p159_p5 = scmp.lt.s32.totalorder %s153_s20, %s153_s20 }
   0xd   :  { %p160_p6 = por %p159_p5, %p158_p4 }
   0xf   :  { %p161_p7 = pnand %p160_p6, %p154_p3 }
  0x11   :  { %164 = shalt.err (!%p161_p7)
}
  0x12   :  { %19 = dma.hbm_to_vmem [thread:$0]  %s281_s0, 256, %s17_s10, [#allocation3]  }
  0x13   :  { %s165_s25 = scalar_lea.hbm %s282_s1, 256 }
  0x14   :  { %p166_p8 = scmp.ne.s32.totalorder %s282_s1, %s165_s25  ;;  %p169_p9 = scmp.lt.u32.totalorder %s165_s25, %s282_s1 }
  0x16   :  { %p171_p10 = pnand %p169_p9, %p166_p8 }
  0x18   :  { %174 = shalt.err (!%p171_p10)
}
  0x19   :  { %s175_s30 = scalar_lea.vmem %s27_s12, 256  ;;  %p180_p12 = scmp.lt.s32.totalorder %s27_s12, %s27_s12 }
  0x1a   :  { %p176_p11 = scmp.ne.s32.totalorder %s27_s12, %s175_s30  ;;  %p181_p13 = scmp.lt.s32.totalorder %s175_s30, %s175_s30 }
  0x1c   :  { %p182_p0 = por %p181_p13, %p180_p12 }
  0x1e   :  { %p183_p1 = pnand %p182_p0, %p176_p11 }
  0x20   :  { %186 = shalt.err (!%p183_p1)
}
  0x21   :  { %29 = dma.hbm_to_vmem [thread:$0]  %s282_s1, 256, %s27_s12, [#allocation6]  }
  0x22   :  { %209 = dma.done.wait [#allocation3], 256  }
  0x23   :  { %210 = vsyncadd [#allocation3], 4294967040 }
  0x24   :  { %211 = dma.done.wait [#allocation6], 256  }
  0x25   :  { %212 = vsyncadd [#allocation6], 4294967040  ;;  %v36_v0 = vld [vmem:[#allocation2] sm:$0xff]  ;;  %v37_v1 = vld [vmem:[#allocation2 + $0x8] sm:$0xff]  ;;  %s217_s1 = smov [#allocation7]  }
  0x26   :  { %v40_v2 = vand.u32 2147483647, %v36_v0  ;;  %v41_v3 = vand.u32 2147483647, %v37_v1  ;;  %v38_v14 = vld [vmem:[#allocation5] sm:$0xff]  ;;  %v48_v18 = vmax.f32 %v36_v0, 0.0 }
  0x27   :  { %vm80_vm0 = vcmp.ge.f32.partialorder %v36_v0, 0.0  ;;  %v50_v21 = vmul.f32 %v38_v14, %v36_v0  ;;  %v90_v23 = vsub.f32 1.0, %v38_v14  ;;  %v39_v24 = vld [vmem:[#allocation5 + $0x8] sm:$0xff]  ;;  %v49_v27 = vmax.f32 %v37_v1, 0.0  ;;  %s118_s4 = sshll.u32 %s217_s1, 4  ;;  %s119_s4 = int_to_ptr.vmem [resolvable:$true] %s118_s4 }
  0x28   :  { %v42_v4 = vsub.f32 0.0, %v40_v2  ;;  %v43_v5 = vsub.f32 0.0, %v41_v3  ;;  %v51_v28 = vmul.f32 %v39_v24, %v37_v1  ;;  %vm81_vm1 = vcmp.ge.f32.partialorder %v37_v1, 0.0  ;;  %s187_s5 = scalar_lea.vmem %s119_s4, 256  ;;  %p192_p3 = scmp.lt.s32.totalorder %s119_s4, %s119_s4 }
  0x29   :  { %v91_v37 = vsub.f32 1.0, %v39_v24  ;;  %v52_v38 = vsub.f32 %v48_v18, %v50_v21  ;;  %v102_v47 = vmul.f32 0.25, %v38_v14  ;;  %v104_v49 = vmul.f32 0.75, %v90_v23  ;;  %p188_p2 = scmp.ne.s32.totalorder %s119_s4, %s187_s5  ;;  %p193_p4 = scmp.lt.s32.totalorder %s187_s5, %s187_s5 }
  0x2a   :  { %v44_v6 = vmul.f32 1.442695, %v42_v4  ;;  %v46_v7 = vmul.f32 1.442695, %v43_v5  ;;  %v53_v50 = vsub.f32 %v49_v27, %v51_v28  ;;  %v103_v53 = vmul.f32 0.25, %v39_v24 }
  0x2b   :  { %v105_v57 = vmul.f32 0.75, %v91_v37  ;;  %v106_v59 = vadd.f32 %v104_v49, %v102_v47  ;;  %p194_p5 = por %p193_p4, %p192_p3 }
  0x2c   :  { %131 = vpow2.f32 %v44_v6 }
  0x2d   :  { %133 = vpow2.f32 %v46_v7  ;;  %v107_v0 = vadd.f32 %v105_v57, %v103_v53  ;;  %p195_p6 = pnand %p194_p5, %p188_p2 }
  0x36   :  { %v132_v8 = vpop.eup %131 }
  0x37   :  { %v134_v9 = vpop.eup %133  ;;  %v54_v10 = vadd.f32 1.0, %v132_v8  ;;  %v57_v12 = vmul.f32 -0.5, %v132_v8  ;;  %v60_v19 = vand.u32 2147483647, %v132_v8 }
  0x38   :  { %v63_v11 = vadd.f32 1.0, %v134_v9  ;;  %v66_v13 = vmul.f32 -0.5, %v134_v9  ;;  %v69_v29 = vand.u32 2147483647, %v134_v9 }
  0x39   :  { %135 = vlog2.f32 %v54_v10  ;;  %v58_v16 = vadd.f32 1.0, %v57_v12  ;;  %vm257_vm2 = vcmp.lt.f32.partialorder %v60_v19, 0.0004427343 }
  0x3a   :  { %137 = vrcp.f32 %v54_v10  ;;  %v67_v25 = vadd.f32 1.0, %v66_v13  ;;  %vm261_vm3 = vcmp.lt.f32.partialorder %v69_v29, 0.0004427343 }
  0x3b   :  { %139 = vlog2.f32 %v63_v11  ;;  %v59_v31 = vmul.f32 %v132_v8, %v58_v16 }
  0x3c   :  { %141 = vrcp.f32 %v63_v11  ;;  %v68_v40 = vmul.f32 %v134_v9, %v67_v25 }
  0x43   :  { %v136_v15 = vpop.eup %135 }
  0x44   :  { %v138_v17 = vpop.eup %137  ;;  %v56_v30 = vmul.f32 0.6931472, %v136_v15 }
  0x45   :  { %v140_v20 = vpop.eup %139  ;;  %v82_v22 = vmul.f32 %v138_v17, %v132_v8 }
  0x46   :  { %v142_v26 = vpop.eup %141  ;;  %v65_v39 = vmul.f32 0.6931472, %v140_v20  ;;  %v62_v46 = vsel %vm257_vm2, %v59_v31, %v56_v30 }
  0x47   :  { %v84_v32 = vsel %vm80_vm0, %v138_v17, %v82_v22  ;;  %v83_v33 = vmul.f32 %v142_v26, %v134_v9  ;;  %v72_v54 = vadd.f32 %v62_v46, %v52_v38 }
  0x48   :  { %v86_v35 = vmul.f32 %v84_v32, %v38_v14  ;;  %v88_v36 = vsub.f32 1.0, %v84_v32  ;;  %v71_v52 = vsel %vm261_vm3, %v68_v40, %v65_v39 }
  0x49   :  { %v85_v41 = vsel %vm81_vm1, %v142_v26, %v83_v33  ;;  %v73_v60 = vadd.f32 %v71_v52, %v53_v50 }
  0x4a   :  { %v92_v42 = vmul.f32 %v90_v23, %v88_v36  ;;  %v87_v44 = vmul.f32 %v85_v41, %v39_v24  ;;  %v89_v45 = vsub.f32 1.0, %v85_v41 }
  0x4c   :  { %v94_v48 = vadd.f32 %v92_v42, %v86_v35  ;;  %v93_v51 = vmul.f32 %v91_v37, %v89_v45 }
  0x4e   :  { %v96_v55 = vsub.f32 1.0, %v94_v48  ;;  %v95_v56 = vadd.f32 %v93_v51, %v87_v44 }
  0x50   :  { %v98_v58 = vmul.f32 %v96_v55, %v96_v55  ;;  %v97_v61 = vsub.f32 1.0, %v95_v56 }
  0x52   :  { %v100_v62 = vmul.f32 %v98_v58, %v72_v54  ;;  %v99_v63 = vmul.f32 %v97_v61, %v97_v61 }
  0x54   :  { %v108_v1 = vmul.f32 %v106_v59, %v100_v62  ;;  %v101_v2 = vmul.f32 %v99_v63, %v73_v60 }
  0x56   :  { %110 = vst [vmem:[#allocation7] sm:$0xff] %v108_v1  ;;  %v109_v3 = vmul.f32 %v107_v0, %v101_v2 }
  0x58   :  { %111 = vst [vmem:[#allocation7 + $0x8] sm:$0xff] %v109_v3 }
  0x59   :  { %198 = shalt.err (!%p195_p6)
}
  0x5a   :  { %s199_s8 = scalar_lea.hbm %s283_s2, 256 }
  0x5b   :  { %p200_p7 = scmp.ne.s32.totalorder %s283_s2, %s199_s8  ;;  %p203_p8 = scmp.lt.u32.totalorder %s199_s8, %s283_s2 }
  0x5d   :  { %p205_p9 = pnand %p203_p8, %p200_p7 }
  0x5f   :  { %208 = shalt.err (!%p205_p9)
}
  0x60   :  { %121 = dma.vmem_to_hbm [thread:$0]  %s119_s4, 256, %s283_s2, [#allocation4]  }
  0x61   :  { %213 = dma.done.wait [#allocation4], 256  }
  0x62   :  { %214 = vsyncadd [#allocation4], 4294967040 }
  0x63   :  { %125 = vsyncpa [#allocation3], 1 }
  0x64   :  { %126 = vsyncpa [#allocation6], 1 }
  0x65   :  { %127 = vsyncpa [#allocation4], 1 }

</bundles_post_ra>
